<compile_context>
chip_gen: v7x
topology: tpu7x:2x2x1
jax: 0.10.0
libtpu: 0.0.40
codegen_flags: <defaults>
</compile_context>

<pallas_src>
import jax
import jax.numpy as jnp
from jax.experimental import pallas as pl
from jax.experimental.pallas import tpu as pltpu

EPS = 1e-5  # PyTorch nn.LayerNorm default eps (must stay > 0)


# ------------------------------ Pallas kernel ------------------------------- #

def _make_kernel(*, Q, S, Cin, Cout, TH, Wout, eps):
    S2C = S * S * Cin
    M = TH * Wout

    def kernel(x_ref, w_ref, b_ref, g_ref, bt_ref, o_ref):
        # x_ref : (Hq, Wq, S*S*Cin)     space-to-depth padded image (bf16), whole image
        # w_ref : (Q*Q, S*S*Cin, Cout)  zero-padded tap-group weights (bf16)
        # b_ref, g_ref, bt_ref : (1, Cout) f32   conv bias / LN gamma / LN beta
        # o_ref : (TH*Wout, Cout)       output rows of this h tile
        h = pl.program_id(1)
        acc = jnp.zeros((M, Cout), jnp.float32)
        for qi in range(Q):
            for qj in range(Q):
                tap = x_ref[pl.ds(h * TH + qi, TH), pl.ds(qj, Wout), :]
                acc = acc + jnp.dot(tap.reshape(M, S2C), w_ref[qi * Q + qj],
                                    preferred_element_type=jnp.float32)
        y = acc + b_ref[...]                                       # conv bias (f32)
        mu = jnp.mean(y, axis=-1, keepdims=True)
        var = jnp.mean(y * y, axis=-1, keepdims=True) - mu * mu    # one-pass stats
        inv = jax.lax.rsqrt(var + eps)
        o_ref[...] = ((y - mu) * (inv * g_ref[...]) + bt_ref[...]).astype(o_ref.dtype)

    return kernel


# ------------------------------ Tile selection ------------------------------- #

def _choose_th(Hout, Wout, B, Cout, row_target=2048):
    """TH | Hout, (TH*Wout) % 8 == 0 (or TH == Hout), ~row_target rows, >=2 grid steps."""
    # keep the f32 accumulator tile <= ~4 MB (Cout lane-padded to >=128)
    row_cap = max(128, min(row_target, (4 << 20) // (4 * max(Cout, 128))))
    target_th = max(1, row_cap // max(Wout, 1))
    divs = [d for d in range(1, Hout + 1) if Hout % d == 0]
    cand = [d for d in divs if d <= target_th and (d * Wout) % 8 == 0]
    th = max(cand) if cand else Hout
    if B * (Hout // th) < 2:            # v7x megacore: want >=2 grid steps overall
        smaller = [d for d in divs if d < th and (d * Wout) % 8 == 0]
        if smaller:
            th = max(smaller)
    return th


# ------------------------------ Module forward ------------------------------ #

def overlap_patch_merging(x, params, *, kernel_size, stride, row_target=2048):
    """Conv2d(K, S, padding=K//2) + LayerNorm over channels. x: (B, Cin, H, W) -> NCHW out."""
    B, Cin, H, W = map(int, x.shape)
    K, S = int(kernel_size), int(stride)
    P = K // 2
    Hout = (H + 2 * P - K) // S + 1
    Wout = (W + 2 * P - K) // S + 1
    Cout = int(params["w"].shape[0])
    Q = -(-K // S)                      # ceil(K/S): tap groups per spatial dim
    S2C = S * S * Cin

    # ---- layout glue on the (small) input: pad + space-to-depth, bf16 ----
    Hq = max(-(-(H + 2 * P) // S), Hout + Q - 1)
    Wq = max(-(-(W + 2 * P) // S), Wout + Q - 1)
    x_nhwc = jnp.transpose(x, (0, 2, 3, 1)).astype(jnp.bfloat16)
    x_pad = jnp.pad(x_nhwc, ((0, 0), (P, Hq * S - H - P), (P, Wq * S - W - P), (0, 0)))
    x_s2d = (x_pad.reshape(B, Hq, S, Wq, S, Cin)
                  .transpose(0, 1, 3, 2, 4, 5)
                  .reshape(B, Hq, Wq, S2C))

    # ---- tap-group weights: (Cout,Cin,K,K) -> (Q*Q, S*S*Cin, Cout), zero padded ----
    w = jnp.transpose(params["w"], (2, 3, 1, 0)).astype(jnp.bfloat16)   # (K, K, Cin, Cout)
    w = jnp.pad(w, ((0, Q * S - K), (0, Q * S - K), (0, 0), (0, 0)))
    wg = (w.reshape(Q, S, Q, S, Cin, Cout)
           .transpose(0, 2, 1, 3, 4, 5)
           .reshape(Q * Q, S2C, Cout))

    bias = params["b"].reshape(1, Cout).astype(jnp.float32)
    gamma = params["ln_g"].reshape(1, Cout).astype(jnp.float32)
    beta = params["ln_b"].reshape(1, Cout).astype(jnp.float32)

    # ---- output-row tiling ----
    TH = _choose_th(Hout, Wout, B, Cout, row_target)
    n_th = Hout // TH
    M_tile = TH * Wout

    kernel = _make_kernel(Q=Q, S=S, Cin=Cin, Cout=Cout, TH=TH, Wout=Wout, eps=EPS)

    out = pl.pallas_call(
        kernel,
        out_shape=jax.ShapeDtypeStruct((B, Hout * Wout, Cout), x.dtype),
        grid=(B, n_th),
        in_specs=[
            # whole space-to-depth image per batch element; reused across all h tiles
            pl.BlockSpec((None, Hq, Wq, S2C), lambda b, h: (b, 0, 0, 0)),
            pl.BlockSpec((Q * Q, S2C, Cout), lambda b, h: (0, 0, 0)),
            pl.BlockSpec((1, Cout), lambda b, h: (0, 0)),
            pl.BlockSpec((1, Cout), lambda b, h: (0, 0)),
            pl.BlockSpec((1, Cout), lambda b, h: (0, 0)),
        ],
        out_specs=pl.BlockSpec((None, M_tile, Cout), lambda b, h: (b, h, 0)),
        compiler_params=pltpu.CompilerParams(
            dimension_semantics=("parallel", "parallel")),
        # TODO(synk): for very large stage-1 images (Cin<=3) the lane-padded whole-image
        # VMEM block grows; there, tile the input H with a halo (pl.ANY + make_async_copy)
        # and/or raise vmem_limit_bytes (keep double-buffered blocks < v7x's 64 MiB).
    )(x_s2d, wg, bias, gamma, beta)

    out = out.reshape(B, Hout, Wout, Cout)
    # Transpose back to NCHW only to match the PyTorch module's interface.
    return jnp.transpose(out, (0, 3, 1, 2))


# -------------------------------- Parameters -------------------------------- #

def init_params(key, in_channels, out_channels, kernel_size):
    k1, k2, k3, k4 = jax.random.split(key, 4)
    fan_in = in_channels * kernel_size * kernel_size
    w = jax.random.normal(k1, (out_channels, in_channels, kernel_size, kernel_size),
                          jnp.float32) / jnp.sqrt(float(fan_in))
    b = 0.1 * jax.random.normal(k2, (out_channels,), jnp.float32)
    g = 1.0 + 0.1 * jax.random.normal(k3, (out_channels,), jnp.float32)
    bt = 0.1 * jax.random.normal(k4, (out_channels,), jnp.float32)
    return {"w": w, "b": b, "ln_g": g, "ln_b": bt}


# -------------------------- Pure-JAX reference check ------------------------- #

def reference(x, params, *, kernel_size, stride):
    K, S = kernel_size, stride
    P = K // 2
    y = jax.lax.conv_general_dilated(
        x, params["w"], window_strides=(S, S), padding=((P, P), (P, P)),
        dimension_numbers=("NCHW", "OIHW", "NCHW"))
    y = y + params["b"].reshape(1, -1, 1, 1)
    yt = jnp.transpose(y, (0, 2, 3, 1))             # (B, Hout, Wout, Cout)
    mu = yt.mean(-1, keepdims=True)
    var = ((yt - mu) ** 2).mean(-1, keepdims=True)
    yn = (yt - mu) / jnp.sqrt(var + EPS) * params["ln_g"] + params["ln_b"]
    return jnp.transpose(yn, (0, 3, 1, 2))


# ------------------------------------ Main ----------------------------------- #

if __name__ == "__main__":
    B, Cin, H, W = 2, 4, 16, 16
    Cout, kernel_size, stride = 32, 3, 2

    key = jax.random.PRNGKey(0)
    kx, kp = jax.random.split(key)
    x = jax.random.normal(kx, (B, Cin, H, W), jnp.float32)
    params = init_params(kp, Cin, Cout, kernel_size)

    # The kernel feeds the MXU bf16 operands (f32 accumulation).  Pre-round x and the
    # conv weight to bf16-representable values so the f32 reference isolates kernel
    # correctness from input quantization and a tight tolerance can be used.
    xq = x.astype(jnp.bfloat16).astype(jnp.float32)
    pq = dict(params)
    pq["w"] = params["w"].astype(jnp.bfloat16).astype(jnp.float32)

    out = overlap_patch_merging(xq, pq, kernel_size=kernel_size, stride=stride)
    out = jax.block_until_ready(out)

    ref = reference(xq, pq, kernel_size=kernel_size, stride=stride)
    P = kernel_size // 2
    Hout = (H + 2 * P - kernel_size) // stride + 1
    Wout = (W + 2 * P - kernel_size) // stride + 1
    assert out.shape == (B, Cout, Hout, Wout), out.shape
    err = float(jnp.max(jnp.abs(out - ref)))
    assert jnp.allclose(out, ref, atol=5e-3, rtol=5e-3), f"max abs err {err}"
    print("KERNEL_OK")
</pallas_src>

<mosaic_0001>
module attributes {stable_mosaic.version = 11 : i64} {
  func.func @kernel(%arg0: i32, %arg1: i32, %arg2: memref<1x9x9x16xbf16, #tpu.memory_space<vmem>>, %arg3: memref<4x16x32xbf16, #tpu.memory_space<vmem>>, %arg4: memref<1x32xf32, #tpu.memory_space<vmem>>, %arg5: memref<1x32xf32, #tpu.memory_space<vmem>>, %arg6: memref<1x32xf32, #tpu.memory_space<vmem>>, %arg7: memref<1x64x32xf32, #tpu.memory_space<vmem>>) attributes {dimension_semantics = [#tpu.dimension_semantics<parallel>, #tpu.dimension_semantics<parallel>], iteration_bounds = array<i64: 2, 1>, scalar_prefetch = 0 : i64, scratch_operands = 0 : i64, tpu.core_type = #tpu.core_type<tc>, window_params = [{transform_indices = @transform_0, window_bounds = array<i64: 1, 9, 9, 16>}, {pipeline_mode = #tpu.pipeline_mode<synchronous>, transform_indices = @transform_1, window_bounds = array<i64: 4, 16, 32>}, {pipeline_mode = #tpu.pipeline_mode<synchronous>, transform_indices = @transform_2, window_bounds = array<i64: 1, 32>}, {pipeline_mode = #tpu.pipeline_mode<synchronous>, transform_indices = @transform_3, window_bounds = array<i64: 1, 32>}, {pipeline_mode = #tpu.pipeline_mode<synchronous>, transform_indices = @transform_4, window_bounds = array<i64: 1, 32>}, {transform_indices = @transform_5, window_bounds = array<i64: 1, 64, 32>}]} {
    %cst = arith.constant 0.000000e+00 : f32
    %0 = vector.broadcast %cst : f32 to vector<64x32xf32>
    %c8_i32 = arith.constant 8 : i32
    %1 = arith.muli %arg1, %c8_i32 : i32
    %c0_i32 = arith.constant 0 : i32
    %2 = arith.addi %1, %c0_i32 : i32
    %c0 = arith.constant 0 : index
    %3 = arith.index_cast %2 : i32 to index
    %c0_0 = arith.constant 0 : index
    %c0_1 = arith.constant 0 : index
    %4 = vector.load %arg2[%c0, %3, %c0_0, %c0_1] : memref<1x9x9x16xbf16, #tpu.memory_space<vmem>>, vector<1x8x8x16xbf16>
    %5 = vector.shape_cast %4 : vector<1x8x8x16xbf16> to vector<8x8x16xbf16>
    %6 = vector.shape_cast %5 : vector<8x8x16xbf16> to vector<64x16xbf16>
    %c0_2 = arith.constant 0 : index
    %c0_3 = arith.constant 0 : index
    %c0_4 = arith.constant 0 : index
    %7 = vector.load %arg3[%c0_2, %c0_3, %c0_4] : memref<4x16x32xbf16, #tpu.memory_space<vmem>>, vector<1x16x32xbf16>
    %8 = vector.shape_cast %7 : vector<1x16x32xbf16> to vector<16x32xbf16>
    %cst_5 = arith.constant dense<0.000000e+00> : vector<64x32xf32>
    %9 = tpu.matmul %6, %8, %cst_5 {dimension_numbers = #tpu.dot_dimension_numbers<[1], [0], [0], [1], [0, 0, 1, 1], [], []>} : vector<64x16xbf16>, vector<16x32xbf16>, vector<64x32xf32> -> vector<64x32xf32>
    %10 = arith.addf %0, %9 : vector<64x32xf32>
    %c8_i32_6 = arith.constant 8 : i32
    %11 = arith.muli %arg1, %c8_i32_6 : i32
    %c0_i32_7 = arith.constant 0 : i32
    %12 = arith.addi %11, %c0_i32_7 : i32
    %c0_8 = arith.constant 0 : index
    %13 = arith.index_cast %12 : i32 to index
    %c1 = arith.constant 1 : index
    %c0_9 = arith.constant 0 : index
    %14 = vector.load %arg2[%c0_8, %13, %c1, %c0_9] : memref<1x9x9x16xbf16, #tpu.memory_space<vmem>>, vector<1x8x8x16xbf16>
    %15 = vector.shape_cast %14 : vector<1x8x8x16xbf16> to vector<8x8x16xbf16>
    %16 = vector.shape_cast %15 : vector<8x8x16xbf16> to vector<64x16xbf16>
    %c1_10 = arith.constant 1 : index
    %c0_11 = arith.constant 0 : index
    %c0_12 = arith.constant 0 : index
    %17 = vector.load %arg3[%c1_10, %c0_11, %c0_12] : memref<4x16x32xbf16, #tpu.memory_space<vmem>>, vector<1x16x32xbf16>
    %18 = vector.shape_cast %17 : vector<1x16x32xbf16> to vector<16x32xbf16>
    %cst_13 = arith.constant dense<0.000000e+00> : vector<64x32xf32>
    %19 = tpu.matmul %16, %18, %cst_13 {dimension_numbers = #tpu.dot_dimension_numbers<[1], [0], [0], [1], [0, 0, 1, 1], [], []>} : vector<64x16xbf16>, vector<16x32xbf16>, vector<64x32xf32> -> vector<64x32xf32>
    %20 = arith.addf %10, %19 : vector<64x32xf32>
    %c8_i32_14 = arith.constant 8 : i32
    %21 = arith.muli %arg1, %c8_i32_14 : i32
    %c1_i32 = arith.constant 1 : i32
    %22 = arith.addi %21, %c1_i32 : i32
    %c0_15 = arith.constant 0 : index
    %23 = arith.index_cast %22 : i32 to index
    %c0_16 = arith.constant 0 : index
    %c0_17 = arith.constant 0 : index
    %24 = vector.load %arg2[%c0_15, %23, %c0_16, %c0_17] : memref<1x9x9x16xbf16, #tpu.memory_space<vmem>>, vector<1x8x8x16xbf16>
    %25 = vector.shape_cast %24 : vector<1x8x8x16xbf16> to vector<8x8x16xbf16>
    %26 = vector.shape_cast %25 : vector<8x8x16xbf16> to vector<64x16xbf16>
    %c2 = arith.constant 2 : index
    %c0_18 = arith.constant 0 : index
    %c0_19 = arith.constant 0 : index
    %27 = vector.load %arg3[%c2, %c0_18, %c0_19] : memref<4x16x32xbf16, #tpu.memory_space<vmem>>, vector<1x16x32xbf16>
    %28 = vector.shape_cast %27 : vector<1x16x32xbf16> to vector<16x32xbf16>
    %cst_20 = arith.constant dense<0.000000e+00> : vector<64x32xf32>
    %29 = tpu.matmul %26, %28, %cst_20 {dimension_numbers = #tpu.dot_dimension_numbers<[1], [0], [0], [1], [0, 0, 1, 1], [], []>} : vector<64x16xbf16>, vector<16x32xbf16>, vector<64x32xf32> -> vector<64x32xf32>
    %30 = arith.addf %20, %29 : vector<64x32xf32>
    %c8_i32_21 = arith.constant 8 : i32
    %31 = arith.muli %arg1, %c8_i32_21 : i32
    %c1_i32_22 = arith.constant 1 : i32
    %32 = arith.addi %31, %c1_i32_22 : i32
    %c0_23 = arith.constant 0 : index
    %33 = arith.index_cast %32 : i32 to index
    %c1_24 = arith.constant 1 : index
    %c0_25 = arith.constant 0 : index
    %34 = vector.load %arg2[%c0_23, %33, %c1_24, %c0_25] : memref<1x9x9x16xbf16, #tpu.memory_space<vmem>>, vector<1x8x8x16xbf16>
    %35 = vector.shape_cast %34 : vector<1x8x8x16xbf16> to vector<8x8x16xbf16>
    %36 = vector.shape_cast %35 : vector<8x8x16xbf16> to vector<64x16xbf16>
    %c3 = arith.constant 3 : index
    %c0_26 = arith.constant 0 : index
    %c0_27 = arith.constant 0 : index
    %37 = vector.load %arg3[%c3, %c0_26, %c0_27] : memref<4x16x32xbf16, #tpu.memory_space<vmem>>, vector<1x16x32xbf16>
    %38 = vector.shape_cast %37 : vector<1x16x32xbf16> to vector<16x32xbf16>
    %cst_28 = arith.constant dense<0.000000e+00> : vector<64x32xf32>
    %39 = tpu.matmul %36, %38, %cst_28 {dimension_numbers = #tpu.dot_dimension_numbers<[1], [0], [0], [1], [0, 0, 1, 1], [], []>} : vector<64x16xbf16>, vector<16x32xbf16>, vector<64x32xf32> -> vector<64x32xf32>
    %40 = arith.addf %30, %39 : vector<64x32xf32>
    %c0_29 = arith.constant 0 : index
    %c0_30 = arith.constant 0 : index
    %41 = vector.load %arg4[%c0_29, %c0_30] : memref<1x32xf32, #tpu.memory_space<vmem>>, vector<1x32xf32>
    %42 = vector.broadcast %41 : vector<1x32xf32> to vector<64x32xf32>
    %43 = arith.addf %40, %42 : vector<64x32xf32>
    %cst_31 = arith.constant dense<0.000000e+00> : vector<64xf32>
    %44 = vector.multi_reduction <add>, %43, %cst_31 [1] : vector<64x32xf32> to vector<64xf32>
    %45 = vector.shape_cast %44 : vector<64xf32> to vector<64x1xf32>
    %cst_32 = arith.constant 3.200000e+01 : f32
    %46 = vector.broadcast %cst_32 : f32 to vector<64x1xf32>
    %47 = arith.divf %45, %46 : vector<64x1xf32>
    %48 = arith.mulf %43, %43 : vector<64x32xf32>
    %cst_33 = arith.constant dense<0.000000e+00> : vector<64xf32>
    %49 = vector.multi_reduction <add>, %48, %cst_33 [1] : vector<64x32xf32> to vector<64xf32>
    %50 = vector.shape_cast %49 : vector<64xf32> to vector<64x1xf32>
    %cst_34 = arith.constant 3.200000e+01 : f32
    %51 = vector.broadcast %cst_34 : f32 to vector<64x1xf32>
    %52 = arith.divf %50, %51 : vector<64x1xf32>
    %53 = arith.mulf %47, %47 : vector<64x1xf32>
    %54 = arith.subf %52, %53 : vector<64x1xf32>
    %cst_35 = arith.constant 9.99999974E-6 : f32
    %55 = vector.broadcast %cst_35 : f32 to vector<64x1xf32>
    %56 = arith.addf %54, %55 : vector<64x1xf32>
    %57 = math.rsqrt %56 : vector<64x1xf32>
    %58 = vector.broadcast %47 : vector<64x1xf32> to vector<64x32xf32>
    %59 = arith.subf %43, %58 : vector<64x32xf32>
    %c0_36 = arith.constant 0 : index
    %c0_37 = arith.constant 0 : index
    %60 = vector.load %arg5[%c0_36, %c0_37] : memref<1x32xf32, #tpu.memory_space<vmem>>, vector<1x32xf32>
    %61 = vector.broadcast %57 : vector<64x1xf32> to vector<64x32xf32>
    %62 = vector.broadcast %60 : vector<1x32xf32> to vector<64x32xf32>
    %63 = arith.mulf %61, %62 : vector<64x32xf32>
    %64 = arith.mulf %59, %63 : vector<64x32xf32>
    %c0_38 = arith.constant 0 : index
    %c0_39 = arith.constant 0 : index
    %65 = vector.load %arg6[%c0_38, %c0_39] : memref<1x32xf32, #tpu.memory_space<vmem>>, vector<1x32xf32>
    %66 = vector.broadcast %65 : vector<1x32xf32> to vector<64x32xf32>
    %67 = arith.addf %64, %66 : vector<64x32xf32>
    %c0_40 = arith.constant 0 : index
    %c0_41 = arith.constant 0 : index
    %c0_42 = arith.constant 0 : index
    %68 = vector.load %arg7[%c0_40, %c0_41, %c0_42] : memref<1x64x32xf32, #tpu.memory_space<vmem>>, vector<1x64x32xf32>
    %69 = vector.shape_cast %68 : vector<1x64x32xf32> to vector<64x32xf32>
    %70 = vector.shape_cast %67 : vector<64x32xf32> to vector<1x64x32xf32>
    tpu.vector_store %arg7[%c0_40, %c0_41, %c0_42], %70 {strides = array<i32>} : memref<1x64x32xf32, #tpu.memory_space<vmem>>, vector<1x64x32xf32>,
    return
  }
  func.func @transform_0(%arg0: i32, %arg1: i32) -> (i32, i32, i32, i32) {
    %c0_i32 = arith.constant 0 : i32
    %c0_i32_0 = arith.constant 0 : i32
    %c0_i32_1 = arith.constant 0 : i32
    %c0_i32_2 = arith.constant 0 : i32
    return %arg0, %c0_i32, %c0_i32_0, %c0_i32_1 : i32, i32, i32, i32
  }
  func.func @transform_1(%arg0: i32, %arg1: i32) -> (i32, i32, i32) {
    %c0_i32 = arith.constant 0 : i32
    %c0_i32_0 = arith.constant 0 : i32
    %c0_i32_1 = arith.constant 0 : i32
    %c0_i32_2 = arith.constant 0 : i32
    return %c0_i32, %c0_i32_0, %c0_i32_1 : i32, i32, i32
  }
  func.func @transform_2(%arg0: i32, %arg1: i32) -> (i32, i32) {
    %c0_i32 = arith.constant 0 : i32
    %c0_i32_0 = arith.constant 0 : i32
    %c0_i32_1 = arith.constant 0 : i32
    return %c0_i32, %c0_i32_0 : i32, i32
  }
  func.func @transform_3(%arg0: i32, %arg1: i32) -> (i32, i32) {
    %c0_i32 = arith.constant 0 : i32
    %c0_i32_0 = arith.constant 0 : i32
    %c0_i32_1 = arith.constant 0 : i32
    return %c0_i32, %c0_i32_0 : i32, i32
  }
  func.func @transform_4(%arg0: i32, %arg1: i32) -> (i32, i32) {
    %c0_i32 = arith.constant 0 : i32
    %c0_i32_0 = arith.constant 0 : i32
    %c0_i32_1 = arith.constant 0 : i32
    return %c0_i32, %c0_i32_0 : i32, i32
  }
  func.func @transform_5(%arg0: i32, %arg1: i32) -> (i32, i32, i32) {
    %c0_i32 = arith.constant 0 : i32
    %c0_i32_0 = arith.constant 0 : i32
    return %arg0, %arg1, %c0_i32 : i32, i32, i32
  }
}

</mosaic_0001>

<bundles_post_ra>
// kernel: tpu_custom_call.1
= control target key start
LH: loop header
LB: loop body
LE: loop exit
PB: predicated region body
PF: predicated region fallthrough
CT: control target
= control target key end

     0   :  { %s1481_s18 = smov 0   ;;  %s1483_s19 = smov 0   ;;  %s1802_s0 = inlined_call_operand.vmem [shape: bf16[2,9,9,16], index: 0, kind: input, shape index: {}]   ;;  %s1803_s1 = inlined_call_operand.vmem [shape: bf16[4,16,32], index: 1, kind: input, shape index: {}]   ;;  %s1804_s2 = inlined_call_operand.vmem [shape: f32[1,32], index: 2, kind: input, shape index: {}]   ;;  %s1805_s3 = inlined_call_operand.vmem [shape: f32[1,32], index: 3, kind: input, shape index: {}]   ;;  %s1806_s4 = inlined_call_operand.vmem [shape: f32[1,32], index: 4, kind: input, shape index: {}]   ;;  %s1807_s5 = inlined_call_operand.vmem [shape: f32[2,64,32], index: 5, kind: output, shape index: {}]  }
   0x1   :  { %s1485_s20 = smov 0  }
   0x2 LB: > { %s27_s21 = sadd.s32 1, %s1445_s19  ;;  %p1214_p0 = scmp.ge.s32.totalorder %s1449_s20, 1  ;;  %s1449_s20 = sphi %s1485_s20, %s15_s20   ;;  %s1445_s19 = sphi %s1483_s19, %s1811_s19   ;;  %s1441_s18 = sphi %s1481_s18, %s1810_s18  }
   0x3   : > { %p29_p1 = scmp.ge.s32.totalorder %s27_s21, 2  ;;  %p201_p2 = scmp.lt.s32.totalorder %s1449_s20, 3 }
   0x5   : > { %s1813_s21 = smov (%p29_p1, %s27_s21), 0  ;;  %p202_p3 = pnand %p1214_p0, %p201_p2 }
   0x6   : > { %v1399_v0 = vld [vmem:[%s1803_s1 + $0x10] sm:$0xff] (!%p202_p3)   ;;  %p233_p4 = scmp.lt.s32.totalorder (!%p202_p3), %s1441_s18, 1  ;;  %v1402_v1 = vld [vmem:[%s1803_s1 + $0x8] sm:$0xff] (!%p202_p3)   ;;  %v1510_v2 = vld [vmem:[%s1803_s1] sm:$0xff] (!%p202_p3)   ;;  %vm407_vm0 = vcmask (!%p202_p3), 130048   ;;  %vm963_vm4 = vcmask (!%p202_p3), 261120  }
   0x7   : > { %205 = sbr.rel (%p202_p3) target bundleno = 477 (0x1dd), region = 40  ;;  %1330 = vmatprep.subr.bf16.mxu0 (!%p202_p3), %v1399_v0  ;;  %1310 = vmatprep.subr.bf16.mxu1 (!%p202_p3), %v1402_v1  ;;  %v1406_v3 = vld [vmem:[%s1803_s1 + $0x18] sm:$0xff] (!%p202_p3)   ;;  %vm271_vm1 = vsmask.f32 (!%p202_p3), 3328  ;;  %vm272_vm2 = vsmask.f32 (!%p202_p3), 7440 }
   0x8   : > { %1331 = vmatpush3.bf16.msra.mxu0 (!%p202_p3), %v1399_v0  ;;  %1311 = vmatpush3.bf16.msra.mxu1 (!%p202_p3), %v1402_v1  ;;  %vm1553_vm3 = vmor (!%p202_p3), %vm271_vm1, %vm272_vm2  ;;  %v1284_v31 = vld [vmem:[%s1804_s2] ss:$0 sm:$0xff] (!%p202_p3) }
   0x9   : > { %1320 = vmatprep.subr.bf16.mxu1 (!%p202_p3), %v1510_v2  ;;  %1340 = vmatprep.subr.bf16.mxu0 (!%p202_p3), %v1406_v3 }
   0xe   : > { %s1815_s18 = smov (!%p233_p4, %s1441_s18), 1 }
   0xf   : > { %s1374_s28 = smul.u32 72, %s1815_s18  ;;  %s1289_s13 = sshll.u32 %s1815_s18, 6 }
  0x10   : > { %s1745_s18 = scalar_lea.vmem %s1807_s5, %s1289_s13 }
  0x11   : > { %s1520_s8 = scalar_lea.vmem %s1802_s0, %s1374_s28 }
  0x12   : > { %v1400_v4 = vld [vmem:[%s1520_s8 + $0x8] ss:$8 sps:$4 sm:$0xff]   ;;  %v1401_v5 = vld [vmem:[%s1520_s8 + $0x18] ss:$8 sps:$4 sm:$0xff]   ;;  %v263_v9 = vld [vmem:[%s1520_s8 + $0x4] sm:$0x1] }
  0x13   : > { %1332 = vmatprep.mubr.msk.bf16.mxu0 %vm407_vm0, %v1400_v4  ;;  %v1403_v6 = vld [vmem:[%s1520_s8 + $0x28] ss:$8 sps:$4 sm:$0xff]   ;;  %v1528_v7 = vld [vmem:[%s1520_s8] sm:$0xf]  ;;  %v264_v10 = vld [vmem:[%s1520_s8 + $0xc] sm:$0x1] }
  0x14   : > { %1333 = vmatmul.mubr.msk.bf16.vlgmr.msra.gmra.mrb[0].mxu0 %vm407_vm0, %v1401_v5  ;;  %v1531_v8 = vld [vmem:[%s1520_s8 + $0x8] sm:$0xf]  ;;  %v275_v11 = vshrl.u32 %v1528_v7, 16  ;;  %v278_v12 = vshll.u32 %v1528_v7, 16  ;;  %v284_v13 = vshll.u32 %v263_v9, 16  ;;  %v298_v16 = vshll.u32 %v264_v10, 16 }
  0x15   : > { %1336 = vmatprep.mubr.msk.bf16.mxu0 %vm407_vm0, %v1403_v6  ;;  %v289_v14 = vshrl.u32 %v1531_v8, 16  ;;  %1341 = vmatpush3.bf16.msra.mxu0 %v1406_v3  ;;  %v292_v15 = vshll.u32 %v1531_v8, 16  ;;  %v1405_v21 = vld [vmem:[%s1520_s8 + $0x38] ss:$8 sps:$4 sm:$0xff]   ;;  %v1542_v24 = vld [vmem:[%s1520_s8 + $0x10] sm:$0xf] }
  0x16   : > { %v277_v17 = vrot.slane %v275_v11, 4  ;;  %v280_v18 = vrot.slane %v278_v12, 5  ;;  %v286_v19 = vrot.slane %v284_v13, 5  ;;  %v300_v23 = vrot.slane %v298_v16, 5  ;;  %v1545_v25 = vld [vmem:[%s1520_s8 + $0x18] sm:$0xf] }
  0x17   : > { %v291_v20 = vrot.slane %v289_v14, 4  ;;  %v294_v22 = vrot.slane %v292_v15, 5  ;;  %v265_v27 = vld [vmem:[%s1520_s8 + $0x14] sm:$0x1]  ;;  %v266_v28 = vld [vmem:[%s1520_s8 + $0x1c] sm:$0x1] }
  0x18   : > { %v281_v26 = vor.u32 %v280_v18, %v277_v17  ;;  %v303_v29 = vshrl.u32 %v1542_v24, 16  ;;  %v306_v30 = vshll.u32 %v1542_v24, 16  ;;  %v312_v33 = vshll.u32 %v265_v27, 16  ;;  %v1257_v36 = vld [vmem:[%s1520_s8 + $0x8] sm:$0xf] }
  0x19   : > { %v295_v32 = vor.u32 %v294_v22, %v291_v20  ;;  %v317_v34 = vshrl.u32 %v1545_v25, 16  ;;  %v320_v35 = vshll.u32 %v1545_v25, 16  ;;  %v326_v40 = vshll.u32 %v266_v28, 16  ;;  %v1258_v41 = vld [vmem:[%s1520_s8 + $0xc] sm:$0x1] }
  0x1a   : > { %v282_v37 = vrot.slane %v281_v26, 4  ;;  %v305_v38 = vrot.slane %v303_v29, 4  ;;  %v308_v39 = vrot.slane %v306_v30, 5  ;;  %v314_v43 = vrot.slane %v312_v33, 5  ;;  %v1259_v46 = vld [vmem:[%s1520_s8 + $0x10] sm:$0xf] }
  0x1b   : > { %v296_v42 = vrot.slane %v295_v32, 4  ;;  %v319_v44 = vrot.slane %v317_v34, 4  ;;  %v322_v45 = vrot.slane %v320_v35, 5  ;;  %v328_v49 = vrot.slane %v326_v40, 5  ;;  %v1260_v53 = vld [vmem:[%s1520_s8 + $0x14] sm:$0x1] }
  0x1c   : > { %1337 = vmatmul.mubr.msk.bf16.gmra.mrb[4].mxu0 %vm407_vm0, %v1405_v21  ;;  %v287_v47 = vsel %vm1553_vm3, %v282_v37, %v286_v19  ;;  %v309_v48 = vor.u32 %v308_v39, %v305_v38  ;;  %v731_v50 = vshrl.u32 %v1257_v36, 16  ;;  %v734_v54 = vshll.u32 %v1257_v36, 16  ;;  %v1569_v56 = vld [vmem:[%s1520_s8 + $0x20] sm:$0xf]  ;;  %v267_v1 = vld [vmem:[%s1520_s8 + $0x24] sm:$0x1] }
  0x1d   : > { %v301_v51 = vsel %vm1553_vm3, %v296_v42, %v300_v23  ;;  %v323_v52 = vor.u32 %v322_v45, %v319_v44  ;;  %v740_v55 = vshll.u32 %v1258_v41, 16  ;;  %v745_v60 = vshrl.u32 %v1259_v46, 16  ;;  %v1576_v6 = vld [vmem:[%s1520_s8 + $0x28] sm:$0xf]  ;;  %v268_v13 = vld [vmem:[%s1520_s8 + $0x2c] sm:$0x1] }
  0x1e   : > { %v1220_v57 = vcombine.low %v287_v47, %v301_v51  ;;  %v310_v58 = vrot.slane %v309_v48, 4  ;;  %v733_v59 = vrot.slane %v731_v50, 4  ;;  %v736_v62 = vrot.slane %v734_v54, 5  ;;  %v1261_v15 = vld [vmem:[%s1520_s8 + $0x18] sm:$0xf] }
  0x1f   : > { %v324_v61 = vrot.slane %v323_v52, 4  ;;  %v742_v63 = vrot.slane %v740_v55, 5  ;;  %v748_v0 = vshll.u32 %v1259_v46, 16  ;;  %v747_v4 = vrot.slane %v745_v60, 4  ;;  %v1262_v26 = vld [vmem:[%s1520_s8 + $0x1c] sm:$0x1] }
  0x20   : > { %1312 = vmatprep.mubr.msk.bf16.mxu1 %vm407_vm0, %v1220_v57  ;;  %v315_v3 = vsel %vm1553_vm3, %v310_v58, %v314_v43  ;;  %v754_v5 = vshll.u32 %v1260_v53, 16  ;;  %v331_v9 = vshrl.u32 %v1569_v56, 16  ;;  %v737_v11 = vor.u32 %v736_v62, %v733_v59  ;;  %v1263_v30 = vld [vmem:[%s1520_s8 + $0x20] sm:$0xf]  ;;  %v1264_v39 = vld [vmem:[%s1520_s8 + $0x24] sm:$0x1] }
  0x21   : > { %v329_v10 = vsel %vm1553_vm3, %v324_v61, %v328_v49  ;;  %v750_v12 = vrot.slane %v748_v0, 5  ;;  %v334_v14 = vshll.u32 %v1569_v56, 16  ;;  %v340_v19 = vshll.u32 %v267_v1, 16  ;;  %v1599_v50 = vld [vmem:[%s1520_s8 + $0x38] sm:$0xf] }
  0x22   : > { %v1221_v16 = vcombine.low %v315_v3, %v329_v10  ;;  %v756_v17 = vrot.slane %v754_v5, 5  ;;  %v333_v18 = vrot.slane %v331_v9, 4  ;;  %v738_v20 = vrot.slane %v737_v11, 4  ;;  %v269_v51 = vld [vmem:[%s1520_s8 + $0x34] sm:$0x1] }
  0x23   : > { %v751_v21 = vor.u32 %v750_v12, %v747_v4  ;;  %v336_v22 = vrot.slane %v334_v14, 5  ;;  %v345_v23 = vshrl.u32 %v1576_v6, 16  ;;  %v342_v27 = vrot.slane %v340_v19, 5  ;;  %v270_v62 = vld [vmem:[%s1520_s8 + $0x3c] sm:$0x1] }
  0x24   : > { %1313 = vmatmul.mubr.msk.bf16.vlgmr.msra.gmra.mrb[0].mxu1 %vm407_vm0, %v1221_v16  ;;  %v348_v28 = vshll.u32 %v1576_v6, 16  ;;  %v354_v29 = vshll.u32 %v268_v13, 16  ;;  %v759_v32 = vshrl.u32 %v1261_v15, 16  ;;  %v743_v33 = vsel %vm1553_vm3, %v738_v20, %v742_v63  ;;  %v1265_v10 = vld [vmem:[%s1520_s8 + $0x28] sm:$0xf] }
  0x25   : > { %1321 = vmatpush3.bf16.msra.mxu1 %v1510_v2  ;;  %v752_v34 = vrot.slane %v751_v21, 4  ;;  %v337_v35 = vor.u32 %v336_v22, %v333_v18  ;;  %v347_v36 = vrot.slane %v345_v23, 4  ;;  %v762_v41 = vshll.u32 %v1261_v15, 16  ;;  %v1596_v2 = vld [vmem:[%s1520_s8 + $0x30] sm:$0xf] }
  0x26   : > { %v350_v37 = vrot.slane %v348_v28, 5  ;;  %v356_v38 = vrot.slane %v354_v29, 5  ;;  %v761_v40 = vrot.slane %v759_v32, 4  ;;  %v768_v44 = vshll.u32 %v1262_v26, 16  ;;  %v1266_v11 = vld [vmem:[%s1520_s8 + $0x2c] sm:$0x1] }
  0x27   : > { %v757_v42 = vsel %vm1553_vm3, %v752_v34, %v756_v17  ;;  %v338_v43 = vrot.slane %v337_v35, 4  ;;  %v773_v45 = vshrl.u32 %v1263_v30, 16  ;;  %v764_v48 = vrot.slane %v762_v41, 5  ;;  %v1267_v15 = vld [vmem:[%s1520_s8 + $0x30] sm:$0xf] }
  0x28   : > { %v1275_v46 = vcombine.low %v743_v33, %v757_v42  ;;  %v351_v47 = vor.u32 %v350_v37, %v347_v36  ;;  %v776_v49 = vshll.u32 %v1263_v30, 16  ;;  %v770_v53 = vrot.slane %v768_v44, 5  ;;  %v1268_v22 = vld [vmem:[%s1520_s8 + $0x34] sm:$0x1]  ;;  %v1269_v30 = vld [vmem:[%s1520_s8 + $0x38] sm:$0xf] }
  0x29   : > { %v343_v52 = vsel %vm1553_vm3, %v338_v43, %v342_v27  ;;  %v775_v54 = vrot.slane %v773_v45, 4  ;;  %v782_v55 = vshll.u32 %v1264_v39, 16  ;;  %v765_v58 = vor.u32 %v764_v48, %v761_v40  ;;  %v1270_v36 = vld [vmem:[%s1520_s8 + $0x3c] sm:$0x1]  ;;  %v1271_v41 = vld [vmem:[%s1520_s8 + $0x40] sm:$0xf] }
  0x2a   : > { %1342 = vmatprep.mubr.msk.bf16.mxu0 %vm407_vm0, %v1275_v46  ;;  %v352_v57 = vrot.slane %v351_v47, 4  ;;  %v778_v59 = vrot.slane %v776_v49, 5  ;;  %v359_v60 = vshrl.u32 %v1596_v2, 16  ;;  %v362_v63 = vshll.u32 %v1596_v2, 16 }
  0x2b   : > { %v784_v61 = vrot.slane %v782_v55, 5  ;;  %v368_v0 = vshll.u32 %v269_v51, 16  ;;  %v373_v1 = vshrl.u32 %v1599_v50, 16  ;;  %v766_v4 = vrot.slane %v765_v58, 4 }
  0x2c   : > { %v357_v3 = vsel %vm1553_vm3, %v352_v57, %v356_v38  ;;  %v779_v5 = vor.u32 %v778_v59, %v775_v54  ;;  %v361_v9 = vrot.slane %v359_v60, 4  ;;  %v364_v13 = vrot.slane %v362_v63, 5 }
  0x2d   : > { %v1222_v12 = vcombine.low %v343_v52, %v357_v3  ;;  %v375_v14 = vrot.slane %v373_v1, 4  ;;  %v1229_v16 = vcombine.low %v1528_v7, %v1531_v8  ;;  %v771_v17 = vsel %vm1553_vm3, %v766_v4, %v770_v53  ;;  %v1272_v52 = vld [vmem:[%s1520_s8 + $0x44] sm:$0x1] }
  0x2e   : > { %v780_v18 = vrot.slane %v779_v5, 4  ;;  %v376_v19 = vshll.u32 %v1599_v50, 16  ;;  %v382_v20 = vshll.u32 %v270_v62, 16  ;;  %v365_v21 = vor.u32 %v364_v13, %v361_v9 }
  0x2f   : > { %1316 = vmatprep.mubr.msk.bf16.mxu1 %vm407_vm0, %v1222_v12  ;;  %v787_v23 = vshrl.u32 %v1265_v10, 16  ;;  %v790_v26 = vshll.u32 %v1265_v10, 16  ;;  %v796_v27 = vshll.u32 %v1266_v11, 16  ;;  %v370_v7 = vrot.slane %v368_v0, 5 }
  0x30   : > { %v785_v28 = vsel %vm1553_vm3, %v780_v18, %v784_v61  ;;  %v378_v8 = vrot.slane %v376_v19, 5  ;;  %v801_v29 = vshrl.u32 %v1267_v15, 16  ;;  %v366_v33 = vrot.slane %v365_v21, 4 }
  0x31   : > { %v1276_v32 = vcombine.low %v771_v17, %v785_v28  ;;  %v789_v34 = vrot.slane %v787_v23, 4  ;;  %v792_v35 = vrot.slane %v790_v26, 5  ;;  %v384_v38 = vrot.slane %v382_v20, 5 }
  0x32   : > { %v379_v37 = vor.u32 %v378_v8, %v375_v14  ;;  %v803_v39 = vrot.slane %v801_v29, 4  ;;  %v804_v40 = vshll.u32 %v1267_v15, 16  ;;  %v798_v43 = vrot.slane %v796_v27, 5 }
  0x33   : > { %1343 = vmatmul.mubr.msk.bf16.vlgmr.msra.gmra.mrb[0].mxu0 %vm407_vm0, %v1276_v32  ;;  %v793_v42 = vor.u32 %v792_v35, %v789_v34  ;;  %v810_v44 = vshll.u32 %v1268_v22, 16  ;;  %v815_v45 = vshrl.u32 %v1269_v30, 16  ;;  %v371_v46 = vsel %vm1553_vm3, %v366_v33, %v370_v7 }
  0x34   : > { %v380_v47 = vrot.slane %v379_v37, 4  ;;  %v806_v48 = vrot.slane %v804_v40, 5  ;;  %v818_v49 = vshll.u32 %v1269_v30, 16  ;;  %v824_v54 = vshll.u32 %v1270_v36, 16 }
  0x35   : > { %v794_v51 = vrot.slane %v793_v42, 4  ;;  %v817_v53 = vrot.slane %v815_v45, 4  ;;  %v829_v55 = vshrl.u32 %v1271_v41, 16  ;;  %v812_v59 = vrot.slane %v810_v44, 5 }
  0x36   : > { %v385_v57 = vsel %vm1553_vm3, %v380_v47, %v384_v38  ;;  %v807_v58 = vor.u32 %v806_v48, %v803_v39  ;;  %v820_v60 = vrot.slane %v818_v49, 5  ;;  %v832_v63 = vshll.u32 %v1271_v41, 16 }
  0x37   : > { %v1223_v61 = vcombine.low %v371_v46, %v385_v57  ;;  %v831_v62 = vrot.slane %v829_v55, 4  ;;  %v799_v0 = vsel %vm1553_vm3, %v794_v51, %v798_v43  ;;  %v838_v4 = vshll.u32 %v1272_v52, 16 }
  0x38   : > { %v808_v1 = vrot.slane %v807_v58, 4  ;;  %v821_v3 = vor.u32 %v820_v60, %v817_v53  ;;  %v826_v5 = vrot.slane %v824_v54, 5  ;;  %v834_v9 = vrot.slane %v832_v63, 5 }
  0x39   : > { %1317 = vmatmul.mubr.msk.bf16.gmra.mrb[4].mxu1 %vm407_vm0, %v1223_v61  ;;  %v840_v14 = vrot.slane %v838_v4, 5  ;;  %v1230_v18 = vcombine.low %v1542_v24, %v1545_v25  ;;  %v1231_v19 = vcombine.low %v1569_v56, %v1576_v6  ;;  %v1232_v21 = vcombine.low %v1596_v2, %v1599_v50 }
  0x3a   : > { %v813_v10 = vsel %vm1553_vm3, %v808_v1, %v812_v59  ;;  %1322 = vmatprep.mubr.msk.bf16.mxu1 %vm407_vm0, %v1229_v16  ;;  %v822_v11 = vrot.slane %v821_v3, 4  ;;  %v835_v13 = vor.u32 %v834_v9, %v831_v62 }
  0x3b   : > { %v1277_v12 = vcombine.low %v799_v0, %v813_v10 }
  0x3c   : > { %v827_v15 = vsel %vm1553_vm3, %v822_v11, %v826_v5  ;;  %v836_v17 = vrot.slane %v835_v13, 4 }
  0x3d   : > { %1346 = vmatprep.mubr.msk.bf16.mxu0 %vm407_vm0, %v1277_v12 }
  0x3e   : > { %v841_v20 = vsel %vm1553_vm3, %v836_v17, %v840_v14 }
  0x3f   : > { %v1278_v16 = vcombine.low %v827_v15, %v841_v20 }
  0x41   : > { %1323 = vmatmul.mubr.msk.bf16.vlgmr.msra.gmra.mrb[0].mxu1 %vm407_vm0, %v1230_v18  ;;  %1347 = vmatmul.mubr.msk.bf16.gmra.mrb[4].mxu0 %vm407_vm0, %v1278_v16 }
  0x42   : > { %1326 = vmatprep.mubr.msk.bf16.mxu1 %vm407_vm0, %v1231_v19 }
  0x49   : > { %1327 = vmatmul.mubr.msk.bf16.gmra.mrb[4].mxu1 %vm407_vm0, %v1232_v21 }
 0x106   : > { %v1344_v22 = vpop.f32.mrb[0].mxu0 }
 0x107   : > { %v909_v24 = vpop.f32.mrb[1].mxu0 }
 0x108   : > { %v1345_v25 = vpop.f32.mrb[2].mxu0 }
 0x109   : > { %v912_v23 = vpop.f32.mrb[3].mxu0 }
 0x114   : > { %v1324_v56 = vpop.f32.mrb[0].mxu1  ;;  %v1348_v6 = vpop.f32.mrb[4].mxu0 }
 0x115   : > { %v1350_v26 = vadd.f32 %v1344_v22, %v1324_v56  ;;  %v557_v27 = vpop.f32.mrb[1].mxu1  ;;  %v925_v28 = vpop.f32.mrb[5].mxu0 }
 0x116   : > { %v1351_v7 = vadd.f32 %v909_v24, %v557_v27  ;;  %v1325_v8 = vpop.f32.mrb[2].mxu1  ;;  %v1349_v2 = vpop.f32.mrb[6].mxu0 }
 0x117   : > { %v1656_v29 = vadd.f32 %v1350_v26, %v1284_v31  ;;  %v1352_v50 = vadd.f32 %v1345_v25, %v1325_v8  ;;  %v560_v30 = vpop.f32.mrb[3].mxu1  ;;  %v928_v33 = vpop.f32.mrb[7].mxu0 }
 0x118   : > { %v1658_v32 = vadd.f32 %v1351_v7, %v1284_v31  ;;  %v1353_v34 = vadd.f32 %v912_v23, %v560_v30 }
 0x119   : > { %v1660_v35 = vadd.f32 %v1352_v50, %v1284_v31  ;;  %v970_v36 = vsel %vm963_vm4, %v1656_v29, 0.0  ;;  %v999_v38 = vmul.f32 %v1656_v29, %v1656_v29 }
 0x11a   : > { %971 = vadd.xlane.f32.xlu1 %v970_v36  ;;  %v964_v37 = vsel %vm963_vm4, %v1658_v32, 0.0  ;;  %v1668_v40 = vadd.f32 %v1353_v34, %v1284_v31  ;;  %v997_v55 = vmul.f32 %v1658_v32, %v1658_v32 }
 0x11b   : > { %965 = vadd.xlane.f32.xlu0 %v964_v37  ;;  %v973_v43 = vsel %vm963_vm4, %v1660_v35, 0.0  ;;  %v1000_v44 = vmul.f32 %v1660_v35, %v1660_v35  ;;  %v1011_v47 = vsel %vm963_vm4, %v999_v38, 0.0 }
 0x11c   : > { %v1328_v39 = vpop.f32.mrb[4].mxu1  ;;  %v998_v53 = vmul.f32 %v1668_v40, %v1668_v40  ;;  %v967_v54 = vsel %vm963_vm4, %v1668_v40, 0.0  ;;  %v1005_v60 = vsel %vm963_vm4, %v997_v55, 0.0 }
 0x11d   : > { %v1354_v41 = vadd.f32 %v1348_v6, %v1328_v39  ;;  %v573_v42 = vpop.f32.mrb[5].mxu1  ;;  %v1014_v52 = vsel %vm963_vm4, %v1000_v44, 0.0 }
 0x11e   : > { %v1355_v45 = vadd.f32 %v925_v28, %v573_v42  ;;  %974 = vadd.xlane.f32.xlu1 %v973_v43  ;;  %v1329_v46 = vpop.f32.mrb[6].mxu1  ;;  %v1008_v58 = vsel %vm963_vm4, %v998_v53, 0.0  ;;  %v1723_v43 = vld [vmem:[%s1805_s3] ss:$0 sm:$0xff] }
 0x11f   : > { %v1356_v48 = vadd.f32 %v1349_v2, %v1329_v46  ;;  %1012 = vadd.xlane.f32.xlu0 %v1011_v47  ;;  %v576_v49 = vpop.f32.mrb[7].mxu1  ;;  %v1685_v59 = vadd.f32 %v1354_v41, %v1284_v31 }
 0x120   : > { %v1357_v51 = vadd.f32 %v928_v33, %v576_v49  ;;  %v1692_v63 = vadd.f32 %v1355_v45, %v1284_v31 }
 0x121   : > { %v1682_v57 = vadd.f32 %v1356_v48, %v1284_v31  ;;  %v982_v0 = vsel %vm963_vm4, %v1685_v59, 0.0  ;;  %v1003_v12 = vmul.f32 %v1685_v59, %v1685_v59 }
 0x122   : > { %1015 = vadd.xlane.f32.xlu1 %v1014_v52  ;;  %v1688_v61 = vadd.f32 %v1357_v51, %v1284_v31  ;;  %v976_v4 = vsel %vm963_vm4, %v1692_v63, 0.0  ;;  %v1001_v5 = vmul.f32 %v1692_v63, %v1692_v63  ;;  %v1733_v52 = vld [vmem:[%s1806_s4] ss:$0 sm:$0xff] }
 0x123   : > { %968 = vadd.xlane.f32.xlu0 %v967_v54  ;;  %v985_v62 = vsel %vm963_vm4, %v1682_v57, 0.0  ;;  %v1004_v10 = vmul.f32 %v1682_v57, %v1682_v57  ;;  %v1023_v14 = vsel %vm963_vm4, %v1003_v12, 0.0 }
 0x124   : > { %v979_v1 = vsel %vm963_vm4, %v1688_v61, 0.0  ;;  %v1002_v3 = vmul.f32 %v1688_v61, %v1688_v61  ;;  %v1017_v11 = vsel %vm963_vm4, %v1001_v5, 0.0 }
 0x125   : > { %v1026_v13 = vsel %vm963_vm4, %v1004_v10, 0.0 }
 0x126   : > { %1009 = vadd.xlane.f32.xlu1 %v1008_v58  ;;  %v1020_v9 = vsel %vm963_vm4, %v1002_v3, 0.0 }
 0x127   : > { %1006 = vadd.xlane.f32.xlu0 %v1005_v60 }
 0x12a   : > { %986 = vadd.xlane.f32.xlu1 %v985_v62 }
 0x12b   : > { %983 = vadd.xlane.f32.xlu0 %v982_v0 }
 0x12e   : > { %980 = vadd.xlane.f32.xlu1 %v979_v1 }
 0x12f   : > { %977 = vadd.xlane.f32.xlu0 %v976_v4 }
 0x132   : > { %1021 = vadd.xlane.f32.xlu1 %v1020_v9 }
 0x133   : > { %1018 = vadd.xlane.f32.xlu0 %v1017_v11 }
 0x136   : > { %1027 = vadd.xlane.f32.xlu1 %v1026_v13 }
 0x137   : > { %1024 = vadd.xlane.f32.xlu0 %v1023_v14 }
 0x1a7   : > { %v972_v15 = vpop.xlane.xlu1 %971 }
 0x1a8   : > { %v966_v17 = vpop.xlane.xlu0 %965  ;;  %v991_v18 = vmul.f32 0.03125, %v972_v15 }
 0x1a9   : > { %v1712_v6 = vmul.f32 0.03125, %v966_v17 }
 0x1aa   : > { %v1039_v21 = vmul.f32 %v991_v18, %v991_v18  ;;  %v1071_v49 = vsub.f32 %v1656_v29, %v991_v18 }
 0x1ab   : > { %v975_v19 = vpop.xlane.xlu1 %974  ;;  %v1037_v33 = vmul.f32 %v1712_v6, %v1712_v6 }
 0x1ac   : > { %v992_v20 = vmul.f32 0.03125, %v975_v19  ;;  %v1013_v16 = vpop.xlane.xlu0 %1012 }
 0x1ad   : > { %v1031_v22 = vmul.f32 0.03125, %v1013_v16 }
 0x1ae   : > { %v1040_v23 = vmul.f32 %v992_v20, %v992_v20  ;;  %v1072_v1 = vsub.f32 %v1660_v35, %v992_v20 }
 0x1af   : > { %v1047_v24 = vsub.f32 %v1031_v22, %v1039_v21  ;;  %v1016_v25 = vpop.xlane.xlu1 %1015 }
 0x1b0   : > { %v1032_v56 = vmul.f32 0.03125, %v1016_v25  ;;  %v969_v31 = vpop.xlane.xlu0 %968  ;;  %v1069_v25 = vsub.f32 %v1658_v32, %v1712_v6 }
 0x1b1   : > { %v1055_v26 = vadd.f32 1e-05, %v1047_v24  ;;  %v1714_v27 = vmul.f32 0.03125, %v969_v31 }
 0x1b2   : > { %v1048_v28 = vsub.f32 %v1032_v56, %v1040_v23 }
 0x1b3   : > { %1411 = vrsqrt.f32 %v1055_v26  ;;  %v1038_v7 = vmul.f32 %v1714_v27, %v1714_v27  ;;  %v1010_v8 = vpop.xlane.xlu1 %1009  ;;  %v1070_v12 = vsub.f32 %v1668_v40, %v1714_v27 }
 0x1b4   : > { %v1056_v2 = vadd.f32 1e-05, %v1048_v28  ;;  %v1030_v50 = vmul.f32 0.03125, %v1010_v8  ;;  %v1007_v30 = vpop.xlane.xlu0 %1006 }
 0x1b5   : > { %v1029_v34 = vmul.f32 0.03125, %v1007_v30 }
 0x1b6   : > { %1413 = vrsqrt.f32 %v1056_v2  ;;  %v1046_v36 = vsub.f32 %v1030_v50, %v1038_v7 }
 0x1b7   : > { %v1045_v37 = vsub.f32 %v1029_v34, %v1037_v33  ;;  %v987_v38 = vpop.xlane.xlu1 %986 }
 0x1b8   : > { %v1054_v39 = vadd.f32 1e-05, %v1046_v36  ;;  %v984_v41 = vpop.xlane.xlu0 %983  ;;  %v1735_v53 = vmul.f32 0.03125, %v987_v38 }
 0x1b9   : > { %v1053_v42 = vadd.f32 1e-05, %v1045_v37  ;;  %v1737_v60 = vmul.f32 0.03125, %v984_v41 }
 0x1ba   : > { %1415 = vrsqrt.f32 %v1054_v39  ;;  %v1044_v15 = vmul.f32 %v1735_v53, %v1735_v53  ;;  %v1076_v41 = vsub.f32 %v1682_v57, %v1735_v53 }
 0x1bb   : > { %1417 = vrsqrt.f32 %v1053_v42  ;;  %v981_v44 = vpop.xlane.xlu1 %980  ;;  %v1043_v17 = vmul.f32 %v1737_v60, %v1737_v60 }
 0x1bc   : > { %v1725_v45 = vmul.f32 0.03125, %v981_v44  ;;  %v978_v46 = vpop.xlane.xlu0 %977  ;;  %v1075_v44 = vsub.f32 %v1685_v59, %v1737_v60 }
 0x1bd   : > { %v1412_v47 = vpop.eup %1411  ;;  %v993_v48 = vmul.f32 0.03125, %v978_v46 }
 0x1be   : > { %v1086_v51 = vmul.f32 %v1412_v47, %v1723_v43  ;;  %v1042_v62 = vmul.f32 %v1725_v45, %v1725_v45  ;;  %v1074_v50 = vsub.f32 %v1688_v61, %v1725_v45 }
 0x1bf   : > { %v1022_v54 = vpop.xlane.xlu1 %1021  ;;  %v1041_v4 = vmul.f32 %v993_v48, %v993_v48  ;;  %v1073_v33 = vsub.f32 %v1692_v63, %v993_v48 }
 0x1c0   : > { %v1414_v55 = vpop.eup %1413  ;;  %v1094_v58 = vmul.f32 %v1086_v51, %v1071_v49  ;;  %v1034_v0 = vmul.f32 0.03125, %v1022_v54  ;;  %v1019_v29 = vpop.xlane.xlu0 %1018 }
 0x1c1   : > { %v1087_v3 = vmul.f32 %v1414_v55, %v1723_v43  ;;  %v1033_v5 = vmul.f32 0.03125, %v1019_v29 }
 0x1c2   : > { %v1109_v9 = vadd.f32 %v1733_v52, %v1094_v58  ;;  %v1050_v10 = vsub.f32 %v1034_v0, %v1042_v62 }
 0x1c3   : > { %v1095_v11 = vmul.f32 %v1087_v3, %v1072_v1  ;;  %v1049_v13 = vsub.f32 %v1033_v5, %v1041_v4  ;;  %v1028_v14 = vpop.xlane.xlu1 %1027 }
 0x1c4   : > { %v1416_v35 = vpop.eup %1415  ;;  %1117 = vst.msk [vmem:[%s1745_s18 + $0x10] sm:$0xff] %vm963_vm4, %v1109_v9  ;;  %v1058_v18 = vadd.f32 1e-05, %v1050_v10  ;;  %v1036_v19 = vmul.f32 0.03125, %v1028_v14  ;;  %v1025_v20 = vpop.xlane.xlu0 %1024 }
 0x1c5   : > { %v1418_v16 = vpop.eup %1417  ;;  %v1110_v21 = vadd.f32 %v1733_v52, %v1095_v11  ;;  %v1085_v40 = vmul.f32 %v1416_v35, %v1723_v43  ;;  %v1057_v22 = vadd.f32 1e-05, %v1049_v13  ;;  %v1035_v24 = vmul.f32 0.03125, %v1025_v20 }
 0x1c6   : > { %v1084_v23 = vmul.f32 %v1418_v16, %v1723_v43  ;;  %1419 = vrsqrt.f32 %v1058_v18  ;;  %v1052_v56 = vsub.f32 %v1036_v19, %v1044_v15 }
 0x1c7   : > { %1118 = vst.msk [vmem:[%s1745_s18 + $0x18] sm:$0xff] %vm963_vm4, %v1110_v21  ;;  %v1093_v31 = vmul.f32 %v1085_v40, %v1070_v12  ;;  %1421 = vrsqrt.f32 %v1057_v22  ;;  %v1051_v26 = vsub.f32 %v1035_v24, %v1043_v17 }
 0x1c8   : > { %v1092_v27 = vmul.f32 %v1084_v23, %v1069_v25  ;;  %v1060_v28 = vadd.f32 1e-05, %v1052_v56 }
 0x1c9   : > { %v1108_v7 = vadd.f32 %v1733_v52, %v1093_v31  ;;  %v1059_v8 = vadd.f32 1e-05, %v1051_v26 }
 0x1ca   : > { %v1107_v2 = vadd.f32 %v1733_v52, %v1092_v27  ;;  %1423 = vrsqrt.f32 %v1060_v28 }
 0x1cb   : > { %1116 = vst.msk [vmem:[%s1745_s18 + $0x8] sm:$0xff] %vm963_vm4, %v1108_v7  ;;  %1425 = vrsqrt.f32 %v1059_v8 }
 0x1cc   : > { %1115 = vst.msk [vmem:[%s1745_s18] sm:$0xff] %vm963_vm4, %v1107_v2 }
 0x1d0   : > { %v1420_v32 = vpop.eup %1419 }
 0x1d1   : > { %v1422_v6 = vpop.eup %1421  ;;  %v1089_v30 = vmul.f32 %v1420_v32, %v1723_v43 }
 0x1d2   : > { %v1088_v34 = vmul.f32 %v1422_v6, %v1723_v43 }
 0x1d3   : > { %v1097_v36 = vmul.f32 %v1089_v30, %v1074_v50 }
 0x1d4   : > { %v1424_v37 = vpop.eup %1423  ;;  %v1096_v38 = vmul.f32 %v1088_v34, %v1073_v33 }
 0x1d5   : > { %v1426_v39 = vpop.eup %1425  ;;  %v1112_v42 = vadd.f32 %v1733_v52, %v1097_v36  ;;  %v1091_v61 = vmul.f32 %v1424_v37, %v1723_v43 }
 0x1d6   : > { %v1111_v63 = vadd.f32 %v1733_v52, %v1096_v38  ;;  %v1090_v45 = vmul.f32 %v1426_v39, %v1723_v43 }
 0x1d7   : > { %1120 = vst.msk [vmem:[%s1745_s18 + $0x28] sm:$0xff] %vm963_vm4, %v1112_v42  ;;  %v1099_v46 = vmul.f32 %v1091_v61, %v1076_v41 }
 0x1d8   : > { %1119 = vst.msk [vmem:[%s1745_s18 + $0x20] sm:$0xff] %vm963_vm4, %v1111_v63  ;;  %v1098_v47 = vmul.f32 %v1090_v45, %v1075_v44 }
 0x1d9   : > { %v1114_v48 = vadd.f32 %v1733_v52, %v1099_v46 }
 0x1da   : > { %v1113_v57 = vadd.f32 %v1733_v52, %v1098_v47 }
 0x1db   : > { %1122 = vst.msk [vmem:[%s1745_s18 + $0x38] sm:$0xff] %vm963_vm4, %v1114_v48 }
 0x1dc   : > { %1121 = vst.msk [vmem:[%s1745_s18 + $0x30] sm:$0xff] %vm963_vm4, %v1113_v57 }
 0x1dd PF: > { %s15_s20 = sadd.s32 1, %s1449_s20   ;;  %s1810_s18 = smov %s1445_s19 }
 0x1de   : > { %p12_p5 = scmp.ge.s32.totalorder %s15_s20, 4   ;;  %s1811_s19 = smov %s1813_s21 }
 0x1e0   :  { %14 = sbr.rel (!%p12_p5) target bundleno = 2 (0x2), region = 75 }

</bundles_post_ra>
